<compile_context>
chip_gen: v5e
topology: v5e:2x2
jax: 0.10.0
libtpu: 0.0.40
codegen_flags: <defaults>
</compile_context>

<pallas_src>
import functools
from typing import NamedTuple

import numpy as np
import jax
import jax.numpy as jnp
from jax import lax
from jax.experimental import pallas as pl
from jax.experimental.pallas import tpu as pltpu

NAMES = {
    'vgg11': ['conv1_1', 'relu1_1', 'pool1', 'conv2_1', 'relu2_1', 'pool2', 'conv3_1', 'relu3_1', 'conv3_2',
              'relu3_2', 'pool3', 'conv4_1', 'relu4_1', 'conv4_2', 'relu4_2', 'pool4', 'conv5_1', 'relu5_1',
              'conv5_2', 'relu5_2', 'pool5'],
    'vgg13': ['conv1_1', 'relu1_1', 'conv1_2', 'relu1_2', 'pool1', 'conv2_1', 'relu2_1', 'conv2_2', 'relu2_2',
              'pool2', 'conv3_1', 'relu3_1', 'conv3_2', 'relu3_2', 'pool3', 'conv4_1', 'relu4_1', 'conv4_2',
              'relu4_2', 'pool4', 'conv5_1', 'relu5_1', 'conv5_2', 'relu5_2', 'pool5'],
    'vgg16': ['conv1_1', 'relu1_1', 'conv1_2', 'relu1_2', 'pool1', 'conv2_1', 'relu2_1', 'conv2_2', 'relu2_2',
              'pool2', 'conv3_1', 'relu3_1', 'conv3_2', 'relu3_2', 'conv3_3', 'relu3_3', 'pool3', 'conv4_1',
              'relu4_1', 'conv4_2', 'relu4_2', 'conv4_3', 'relu4_3', 'pool4', 'conv5_1', 'relu5_1', 'conv5_2',
              'relu5_2', 'conv5_3', 'relu5_3', 'pool5'],
    'vgg19': ['conv1_1', 'relu1_1', 'conv1_2', 'relu1_2', 'pool1', 'conv2_1', 'relu2_1', 'conv2_2', 'relu2_2',
              'pool2', 'conv3_1', 'relu3_1', 'conv3_2', 'relu3_2', 'conv3_3', 'relu3_3', 'conv3_4', 'relu3_4',
              'pool3', 'conv4_1', 'relu4_1', 'conv4_2', 'relu4_2', 'conv4_3', 'relu4_3', 'conv4_4', 'relu4_4',
              'pool4', 'conv5_1', 'relu5_1', 'conv5_2', 'relu5_2', 'conv5_3', 'relu5_3', 'conv5_4', 'relu5_4',
              'pool5'],
}


def insert_bn(names):
    names_bn = []
    for name in names:
        names_bn.append(name)
        if 'conv' in name:
            position = name.replace('conv', '')
            names_bn.append('bn' + position)
    return names_bn


_VGG_BLOCK_OUT = {1: 64, 2: 128, 3: 256, 4: 512, 5: 512}
_IMAGENET_MEAN = (0.485, 0.456, 0.406)
_IMAGENET_STD = (0.229, 0.224, 0.225)

_ALIGN = 16          # sublane alignment for bf16 (16, 128) tiles
_TM_MAX = 512        # max flat rows per conv output block (MXU M dimension)


def _round_up(v, m):
    return ((v + m - 1) // m) * m


def _tco_max():
    """Per-generation output-channel tile: 128 on v5e (128x128 MXU), else 256."""
    try:
        kind = jax.devices()[0].device_kind.lower()
        if 'v5 lite' in kind or 'v5e' in kind or 'v5litepod' in kind:
            return 128
    except Exception:
        pass
    return 256


def _vmem_limit_bytes():
    """Per-generation scoped-VMEM budget (leave headroom on v7x's 64 MiB)."""
    try:
        cap = pltpu.get_tpu_info().vmem_capacity_bytes
        return int(min(cap * 5 // 8, 96 * 1024 * 1024))
    except Exception:
        return 48 * 1024 * 1024


# ------------------------- padded-flat layout geometry ----------------------
#
# A padded (H+2, W+2) plane is stored row-flattened with row stride Wrow
# (multiple of 16) and the interior pixel (y, x) at flat index
#   off0 + y * Wrow + x,
# where off0 is a multiple of the chunk size TM (so every output block start
# and every +-Wrow-shifted tap load is 16-aligned).  All non-interior flat
# positions (halos, dead columns, prefix, tail) are kept exactly zero so a 3x3
# conv is 9 shifted contiguous full-plane matmuls.


class _Geom(NamedTuple):
    H: int
    W: int
    Wrow: int      # padded row stride (multiple of 16)
    off0: int      # flat index of interior pixel (0, 0); multiple of TM
    TM: int        # flat rows per conv output block (multiple of 16)
    n_chunks: int  # number of blocks containing interior pixels
    n_blk: int     # total output blocks = L // TM
    L: int         # flat buffer length (multiple of TM)


@functools.lru_cache(maxsize=None)
def _geom(H, W):
    Wrow = _round_up(W + 2, _ALIGN)
    span = (H - 1) * Wrow + W                      # flat extent of the interior
    TM = _round_up(min(span, _TM_MAX), _ALIGN)
    n_chunks = -(-span // TM)
    off0 = _round_up(Wrow + 1, TM)                 # >= Wrow+1 (top halo fits), aligned
    need = max(off0 + n_chunks * TM + Wrow + 2,    # widest shifted tap read
               off0 + H * Wrow + W + 1)            # bottom halo row
    L = _round_up(need, TM)
    return _Geom(H, W, Wrow, off0, TM, n_chunks, L // TM, L)


_MASK_CACHE = {}


def _interior_mask(g):
    """(1, L, 1) bf16 mask: 1 on interior positions of the padded-flat plane."""
    key = (g.H, g.W, g.Wrow, g.off0, g.L)
    if key not in _MASK_CACHE:
        q = np.arange(g.L)
        rel = q - g.off0
        y, x = rel // g.Wrow, rel % g.Wrow
        m = (rel >= 0) & (y < g.H) & (x < g.W)
        _MASK_CACHE[key] = jnp.asarray(m.astype(np.float32),
                                       dtype=jnp.bfloat16).reshape(1, g.L, 1)
    return _MASK_CACHE[key]


def _norm_affine(C, range_norm, use_input_norm):
    """Combined per-channel affine y = a*x + c for range/input normalization."""
    a = np.ones((C,), np.float32)
    c = np.zeros((C,), np.float32)
    if range_norm:                      # [-1,1] -> [0,1]
        a *= 0.5
        c += 0.5
    if use_input_norm:                  # (x - mean) / std
        mean = np.asarray(_IMAGENET_MEAN, np.float32)
        std = np.asarray(_IMAGENET_STD, np.float32)
        a = a / std
        c = (c - mean) / std
    return (jnp.asarray(a).reshape(1, 1, 1, C),
            jnp.asarray(c).reshape(1, 1, 1, C))


# ----------------------------- Pallas kernels ------------------------------


def _norm_pallas(x_nhwc, scale, offset):
    """Per-channel affine normalization + cast to bf16.  NHWC in/out."""
    # TODO(synk): fold this affine into conv1_1 (scale W per cin, adjust bias,
    # pad halo with -c/a) to save one memory-bound pass over the input.
    N, H, W, C = x_nhwc.shape

    def kernel(x_ref, s_ref, c_ref, o_ref):
        o_ref[...] = (x_ref[...] * s_ref[...] + c_ref[...]).astype(jnp.bfloat16)

    return pl.pallas_call(
        kernel,
        out_shape=jax.ShapeDtypeStruct((N, H, W, C), jnp.bfloat16),
        grid=(N,),
        in_specs=[
            pl.BlockSpec((1, H, W, C), lambda n: (n, 0, 0, 0)),
            pl.BlockSpec((1, 1, 1, C), lambda n: (0, 0, 0, 0)),
            pl.BlockSpec((1, 1, 1, C), lambda n: (0, 0, 0, 0)),
        ],
        out_specs=pl.BlockSpec((1, H, W, C), lambda n: (n, 0, 0, 0)),
        compiler_params=pltpu.CompilerParams(dimension_semantics=("parallel",)),
    )(x_nhwc, scale, offset)


def _to_padded_flat(x_nhwc, g):
    """Glue: put the (tiny, 3-channel) input into the padded-flat layout."""
    N, H, W, C = x_nhwc.shape
    xw = jnp.pad(x_nhwc, ((0, 0), (0, 0), (0, g.Wrow - W), (0, 0)))
    flat = xw.reshape(N, H * g.Wrow, C)
    pre = jnp.zeros((N, g.off0, C), flat.dtype)
    post = jnp.zeros((N, g.L - g.off0 - H * g.Wrow, C), flat.dtype)
    return jnp.concatenate([pre, flat, post], axis=1)


def _capture(x_flat, g, c_logical):
    """Glue: padded-flat bf16 -> NCHW f32 feature for the output dict."""
    N = x_flat.shape[0]
    body = x_flat[:, g.off0:g.off0 + g.H * g.Wrow, :]
    img = body.reshape(N, g.H, g.Wrow, body.shape[-1])[:, :, :g.W, :c_logical]
    return jnp.transpose(img.astype(jnp.float32), (0, 3, 1, 2))


def _conv3x3_flat(x_flat, w9, b2, g, apply_relu):
    """3x3 conv (stride 1, pad 1) on padded-flat activations.

    x_flat: (N, L, Cin) bf16 zero-halo padded-flat plane.
    w9:     (9, Cin, Cout) bf16, tap index t = ky*3 + kx.
    b2:     (1, Cout) f32.
    Output: (N, L, Cout) bf16 padded-flat plane (zero halo), ReLU fused if asked.
    """
    N, L, Cin = x_flat.shape
    assert L == g.L
    Cout = w9.shape[-1]
    tco_max = _tco_max()
    tco = Cout if Cout <= tco_max else tco_max
    assert Cout % tco == 0
    n_co = Cout // tco
    TM, Wrow, off0 = g.TM, g.Wrow, g.off0
    blk0 = off0 // TM                     # first block containing interior rows
    mask = _interior_mask(g)
    out_dtype = x_flat.dtype
    vmem_limit = _vmem_limit_bytes()

    # The input plane stays resident in VMEM (the output is streamed in
    # (TM, tco) tiles).  Guard the budget explicitly for large resolutions.
    # TODO(synk): halo-windowed manual double-buffering (memory_space=pl.ANY +
    # pltpu.make_async_copy) to tile the *input* plane for very large images.
    est = 2 * (L * Cin * 2) + 2 * (9 * Cin * tco * 2) + 4 * (TM * tco * 2) \
        + TM * tco * 4 + L * 2
    if est > vmem_limit:
        raise NotImplementedError(
            "activation plane too large for resident-input conv "
            f"(~{est >> 20} MiB est. > {vmem_limit >> 20} MiB); "
            "spatial input tiling not implemented")

    def kernel(x_ref, w_ref, b_ref, m_ref, o_ref):
        blk = pl.program_id(2)
        interior = jnp.logical_and(blk >= blk0, blk < blk0 + g.n_chunks)

        @pl.when(interior)
        def _():
            # row0 and the +-Wrow tap offsets are 16-aligned by construction
            # (off0 multiple of TM, Wrow multiple of 16).
            row0 = blk * TM
            # bias folded into the accumulator init (hoisted, single broadcast);
            # taps accumulate into a chained value so Mosaic keeps the
            # accumulation on the MXU result path instead of RMW'ing scratch.
            acc = jnp.broadcast_to(b_ref[...], (TM, tco))
            for t in range(9):
                dy, dx = t // 3 - 1, t % 3 - 1
                lhs = x_ref[0, pl.ds(row0 + dy * Wrow + dx, TM), :]
                acc = acc + jnp.dot(lhs, w_ref[t],
                                    preferred_element_type=jnp.float32)
            if apply_relu:
                acc = jnp.maximum(acc, 0.0)
            # zero the halo / dead positions interleaved in this block
            o_ref[...] = (acc.astype(out_dtype) * m_ref[0])[None]

        @pl.when(jnp.logical_not(interior))
        def _():
            # prefix / tail blocks: pure halo -> zeros
            o_ref[...] = jnp.zeros((1, TM, tco), out_dtype)

    flops = 2 * 9 * N * g.H * g.W * Cin * Cout
    bytes_accessed = N * L * (Cin + Cout) * 2 + 9 * Cin * Cout * 2 + Cout * 4

    return pl.pallas_call(
        kernel,
        out_shape=jax.ShapeDtypeStruct((N, L, Cout), out_dtype),
        grid=(N, n_co, g.n_blk),
        in_specs=[
            pl.BlockSpec((1, L, Cin), lambda n, co, m: (n, 0, 0)),
            pl.BlockSpec((9, Cin, tco), lambda n, co, m: (0, 0, co)),
            pl.BlockSpec((1, tco), lambda n, co, m: (0, co)),
            pl.BlockSpec((1, TM, 1), lambda n, co, m: (0, m, 0)),
        ],
        out_specs=pl.BlockSpec((1, TM, tco), lambda n, co, m: (n, m, co)),
        compiler_params=pltpu.CompilerParams(
            dimension_semantics=("parallel", "parallel", "parallel"),
            vmem_limit_bytes=vmem_limit),
        cost_estimate=pl.CostEstimate(flops=flops, transcendentals=0,
                                      bytes_accessed=bytes_accessed),
    )(x_flat, w9, b2, mask)


def _relu_flat(x_flat):
    """Standalone ReLU on the padded-flat layout (only used when a
    pre-activation conv output was explicitly requested)."""
    N, L, C = x_flat.shape

    def kernel(x_ref, o_ref):
        o_ref[...] = jnp.maximum(x_ref[...], 0)

    return pl.pallas_call(
        kernel,
        out_shape=jax.ShapeDtypeStruct((N, L, C), x_flat.dtype),
        grid=(N,),
        in_specs=[pl.BlockSpec((1, L, C), lambda n: (n, 0, 0))],
        out_specs=pl.BlockSpec((1, L, C), lambda n: (n, 0, 0)),
        compiler_params=pltpu.CompilerParams(dimension_semantics=("parallel",)),
    )(x_flat)


def _maxpool_flat(x_flat, g_in, g_out, stride):
    """MaxPool2d(kernel_size=2, stride=stride) on the padded-flat layout.

    No strided ref loads: two contiguous row spans are loaded per output row
    and the horizontal 2-max / subsample is done at the value level.
    """
    # TODO(synk): fuse this pool into the preceding conv's epilogue to save a
    # full HBM round trip of the largest activations.
    N, L_in, C = x_flat.shape
    assert L_in == g_in.L
    if stride not in (1, 2):
        # TODO(synk): general pooling_stride needs a gather-style subsample.
        raise NotImplementedError("pooling_stride must be 1 or 2")
    s = stride
    Ho, Wo = g_out.H, g_out.W
    assert Ho == (g_in.H - 2) // s + 1 and Wo == (g_in.W - 2) // s + 1
    Wc = 2 * Wo if s == 2 else Wo + 1
    Wrow_i, off0_i = g_in.Wrow, g_in.off0
    Wrow_o, off0_o, L_out = g_out.Wrow, g_out.off0, g_out.L
    tail0 = off0_o + Ho * Wrow_o
    dt = x_flat.dtype

    def kernel(x_ref, o_ref):
        # zero only the halo prefix / tail; interior rows + row gaps below.
        o_ref[0, 0:off0_o, :] = jnp.zeros((off0_o, C), dt)
        o_ref[0, tail0:L_out, :] = jnp.zeros((L_out - tail0, C), dt)
        gap = jnp.zeros((Wrow_o - Wo, C), dt)   # hoisted out of the loop

        def row(yo, carry):
            bi = off0_i + (yo * s) * Wrow_i
            r0 = x_ref[0, pl.ds(bi, Wc), :]
            r1 = x_ref[0, pl.ds(bi + Wrow_i, Wc), :]
            vm = jnp.maximum(r0, r1)
            if s == 2:
                m = jnp.max(vm.reshape(Wo, 2, C), axis=1)
            else:
                m = jnp.maximum(vm[:Wo, :], vm[1:Wo + 1, :])
            ob = off0_o + yo * Wrow_o           # 16-aligned by construction
            o_ref[0, pl.ds(ob, Wo), :] = m
            o_ref[0, pl.ds(ob + Wo, Wrow_o - Wo), :] = gap
            return carry

        lax.fori_loop(0, Ho, row, 0)

    return pl.pallas_call(
        kernel,
        out_shape=jax.ShapeDtypeStruct((N, L_out, C), dt),
        grid=(N,),
        in_specs=[pl.BlockSpec((1, L_in, C), lambda n: (n, 0, 0))],
        out_specs=pl.BlockSpec((1, L_out, C), lambda n: (n, 0, 0)),
        compiler_params=pltpu.CompilerParams(dimension_semantics=("parallel",)),
    )(x_flat)


# ------------------------------ module wrapper ------------------------------


class VGGFeatureExtractorPallas:
    """Pallas reimplementation of VGGFeatureExtractor.forward (vgg*, no BN)."""

    def __init__(self, layer_name_list, vgg_type='vgg19', use_input_norm=True,
                 range_norm=True, remove_pooling=False, pooling_stride=2, seed=0):
        if 'bn' in vgg_type:
            # TODO(synk): '_bn' VGG variants (insert_bn) not implemented - no BN stats available.
            raise NotImplementedError("bn variants not supported in this synthetic kernel")
        self.layer_name_list = list(layer_name_list)
        self.use_input_norm = use_input_norm
        self.range_norm = range_norm
        self.remove_pooling = remove_pooling
        self.pooling_stride = pooling_stride

        full_names = NAMES[vgg_type]
        max_idx = 0
        for v in layer_name_list:
            idx = full_names.index(v)
            if idx > max_idx:
                max_idx = idx
        names = full_names[:max_idx + 1]
        self.names = [n for n in names if not ('pool' in n and remove_pooling)]

        # Deterministic synthetic weights (He init), NOT a checkpoint load.
        # TODO(synk): pretrained torchvision VGG weight loading not available here.
        key = jax.random.PRNGKey(seed)
        self.params = {}       # f32 (3,3,Cin,Cout), (Cout,)   -- for the reference
        self.params_dev = {}   # bf16 (9,Cin_s,Cout_s), f32 (1,Cout_s) -- for kernels
        cin, cin_store = 3, 3
        for name in self.names:
            if name.startswith('conv'):
                block = int(name[4])
                cout = _VGG_BLOCK_OUT[block]
                cout_store = max(cout, 128)   # lane-dense activations (pad 64 -> 128)
                key, kw, kb = jax.random.split(key, 3)
                w = jax.random.normal(kw, (3, 3, cin, cout), jnp.float32) * jnp.sqrt(2.0 / (9 * cin))
                b = jax.random.normal(kb, (cout,), jnp.float32) * 0.01
                self.params[name] = (w, b)
                w9 = jnp.zeros((9, cin_store, cout_store), jnp.bfloat16)
                w9 = w9.at[:, :cin, :cout].set(w.reshape(9, cin, cout).astype(jnp.bfloat16))
                b2 = jnp.zeros((1, cout_store), jnp.float32).at[:, :cout].set(b.reshape(1, cout))
                self.params_dev[name] = (w9, b2)
                cin, cin_store = cout, cout_store

    def __call__(self, x_nchw):
        N, C, H, W = x_nchw.shape
        if self.use_input_norm and C != 3:
            raise ValueError("use_input_norm=True requires 3-channel input")
        x_nhwc = jnp.transpose(x_nchw.astype(jnp.float32), (0, 2, 3, 1))
        scale, offset = _norm_affine(C, self.range_norm, self.use_input_norm)
        xn = _norm_pallas(x_nhwc, scale, offset)          # (N,H,W,C) bf16
        g = _geom(H, W)
        x = _to_padded_flat(xn, g)                         # (N,L,C) bf16, zero halo
        c_log = C

        output = {}
        names = self.names
        i = 0
        while i < len(names):
            name = names[i]
            if name.startswith('conv'):
                w9, b2 = self.params_dev[name]
                fuse = (i + 1 < len(names) and names[i + 1].startswith('relu')
                        and name not in self.layer_name_list)
                x = _conv3x3_flat(x, w9, b2, g, apply_relu=fuse)
                c_log = self.params[name][1].shape[0]
                if not fuse and name in self.layer_name_list:
                    output[name] = _capture(x, g, c_log)
                if fuse:
                    i += 1                                 # consumed the relu
                    if names[i] in self.layer_name_list:
                        output[names[i]] = _capture(x, g, c_log)
            elif name.startswith('relu'):
                x = _relu_flat(x)
                if name in self.layer_name_list:
                    output[name] = _capture(x, g, c_log)
            elif name.startswith('pool'):
                s = self.pooling_stride
                Ho = (g.H - 2) // s + 1
                Wo = (g.W - 2) // s + 1
                g_out = _geom(Ho, Wo)
                x = _maxpool_flat(x, g, g_out, s)
                g = g_out
                if name in self.layer_name_list:
                    output[name] = _capture(x, g, c_log)
            i += 1
        return output


# ---------------------------- pure-JAX reference ----------------------------


def _reference_forward(model, x_nchw):
    """Mirrors the kernel dataflow (bf16 activations/weights, f32 accumulation)."""
    x = jnp.transpose(x_nchw.astype(jnp.float32), (0, 2, 3, 1))
    C = x.shape[-1]
    scale, offset = _norm_affine(C, model.range_norm, model.use_input_norm)
    x = (x * scale + offset).astype(jnp.bfloat16)
    out = {}
    for name in model.names:
        if name.startswith('conv'):
            w, b = model.params[name]
            y = lax.conv_general_dilated(
                x, w.astype(jnp.bfloat16), (1, 1), 'SAME',
                dimension_numbers=('NHWC', 'HWIO', 'NHWC'),
                preferred_element_type=jnp.float32)
            x = (y + b).astype(jnp.bfloat16)
        elif name.startswith('relu'):
            x = jnp.maximum(x, 0)
        elif name.startswith('pool'):
            s = model.pooling_stride
            x = lax.reduce_window(x, jnp.asarray(-jnp.inf, x.dtype), lax.max,
                                  (1, 2, 2, 1), (1, s, s, 1), 'VALID')
        if name in model.layer_name_list:
            out[name] = jnp.transpose(x.astype(jnp.float32), (0, 3, 1, 2))
    return out


if __name__ == "__main__":
    key = jax.random.PRNGKey(0)
    x = jax.random.uniform(key, (2, 3, 16, 16), jnp.float32,
                           minval=-1.0, maxval=1.0)     # range [-1,1] (range_norm=True)

    model = VGGFeatureExtractorPallas(['relu1_1', 'relu2_1', 'relu3_1'])
    feats = model(x)
    feats = {k: jax.block_until_ready(v) for k, v in feats.items()}

    ref = _reference_forward(model, x)
    for k in model.layer_name_list:
        assert feats[k].shape == ref[k].shape, (k, feats[k].shape, ref[k].shape)
        assert jnp.allclose(feats[k], ref[k], rtol=2e-2, atol=2e-2), f"mismatch at {k}"

    print("KERNEL_OK")
</pallas_src>

<mosaic_0001>
module attributes {stable_mosaic.version = 11 : i64} {
  func.func @kernel(%arg0: i32, %arg1: memref<1x16x16x3xf32, #tpu.memory_space<vmem>>, %arg2: memref<1x1x1x3xf32, #tpu.memory_space<vmem>>, %arg3: memref<1x1x1x3xf32, #tpu.memory_space<vmem>>, %arg4: memref<1x16x16x3xbf16, #tpu.memory_space<vmem>>) attributes {dimension_semantics = [#tpu.dimension_semantics<parallel>], iteration_bounds = array<i64: 2>, scalar_prefetch = 0 : i64, scratch_operands = 0 : i64, tpu.core_type = #tpu.core_type<tc>, window_params = [{transform_indices = @transform_0, window_bounds = array<i64: 1, 16, 16, 3>}, {pipeline_mode = #tpu.pipeline_mode<synchronous>, transform_indices = @transform_1, window_bounds = array<i64: 1, 1, 1, 3>}, {pipeline_mode = #tpu.pipeline_mode<synchronous>, transform_indices = @transform_2, window_bounds = array<i64: 1, 1, 1, 3>}, {transform_indices = @transform_3, window_bounds = array<i64: 1, 16, 16, 3>}]} {
    %c0 = arith.constant 0 : index
    %c0_0 = arith.constant 0 : index
    %c0_1 = arith.constant 0 : index
    %c0_2 = arith.constant 0 : index
    %0 = vector.load %arg1[%c0, %c0_0, %c0_1, %c0_2] : memref<1x16x16x3xf32, #tpu.memory_space<vmem>>, vector<1x16x16x3xf32>
    %c0_3 = arith.constant 0 : index
    %c0_4 = arith.constant 0 : index
    %c0_5 = arith.constant 0 : index
    %c0_6 = arith.constant 0 : index
    %1 = vector.load %arg2[%c0_3, %c0_4, %c0_5, %c0_6] : memref<1x1x1x3xf32, #tpu.memory_space<vmem>>, vector<1x1x1x3xf32>
    %2 = vector.broadcast %1 : vector<1x1x1x3xf32> to vector<1x16x16x3xf32>
    %3 = arith.mulf %0, %2 : vector<1x16x16x3xf32>
    %c0_7 = arith.constant 0 : index
    %c0_8 = arith.constant 0 : index
    %c0_9 = arith.constant 0 : index
    %c0_10 = arith.constant 0 : index
    %4 = vector.load %arg3[%c0_7, %c0_8, %c0_9, %c0_10] : memref<1x1x1x3xf32, #tpu.memory_space<vmem>>, vector<1x1x1x3xf32>
    %5 = vector.broadcast %4 : vector<1x1x1x3xf32> to vector<1x16x16x3xf32>
    %6 = arith.addf %3, %5 : vector<1x16x16x3xf32>
    %7 = arith.truncf %6 : vector<1x16x16x3xf32> to vector<1x16x16x3xbf16>
    %c0_11 = arith.constant 0 : index
    %c0_12 = arith.constant 0 : index
    %c0_13 = arith.constant 0 : index
    %c0_14 = arith.constant 0 : index
    %8 = vector.load %arg4[%c0_11, %c0_12, %c0_13, %c0_14] : memref<1x16x16x3xbf16, #tpu.memory_space<vmem>>, vector<1x16x16x3xbf16>
    tpu.vector_store %arg4[%c0_11, %c0_12, %c0_13, %c0_14], %7 {strides = array<i32>} : memref<1x16x16x3xbf16, #tpu.memory_space<vmem>>, vector<1x16x16x3xbf16>,
    return
  }
  func.func @transform_0(%arg0: i32) -> (i32, i32, i32, i32) {
    %c0_i32 = arith.constant 0 : i32
    %c0_i32_0 = arith.constant 0 : i32
    %c0_i32_1 = arith.constant 0 : i32
    %c0_i32_2 = arith.constant 0 : i32
    return %arg0, %c0_i32, %c0_i32_0, %c0_i32_1 : i32, i32, i32, i32
  }
  func.func @transform_1(%arg0: i32) -> (i32, i32, i32, i32) {
    %c0_i32 = arith.constant 0 : i32
    %c0_i32_0 = arith.constant 0 : i32
    %c0_i32_1 = arith.constant 0 : i32
    %c0_i32_2 = arith.constant 0 : i32
    %c0_i32_3 = arith.constant 0 : i32
    return %c0_i32, %c0_i32_0, %c0_i32_1, %c0_i32_2 : i32, i32, i32, i32
  }
  func.func @transform_2(%arg0: i32) -> (i32, i32, i32, i32) {
    %c0_i32 = arith.constant 0 : i32
    %c0_i32_0 = arith.constant 0 : i32
    %c0_i32_1 = arith.constant 0 : i32
    %c0_i32_2 = arith.constant 0 : i32
    %c0_i32_3 = arith.constant 0 : i32
    return %c0_i32, %c0_i32_0, %c0_i32_1, %c0_i32_2 : i32, i32, i32, i32
  }
  func.func @transform_3(%arg0: i32) -> (i32, i32, i32, i32) {
    %c0_i32 = arith.constant 0 : i32
    %c0_i32_0 = arith.constant 0 : i32
    %c0_i32_1 = arith.constant 0 : i32
    %c0_i32_2 = arith.constant 0 : i32
    return %arg0, %c0_i32, %c0_i32_0, %c0_i32_1 : i32, i32, i32, i32
  }
}

</mosaic_0001>

<bundles_post_ra>
// kernel: tpu_custom_call.1
= control target key start
LH: loop header
LB: loop body
LE: loop exit
PB: predicated region body
PF: predicated region fallthrough
CT: control target
= control target key end

     0   :  { %s446_s12 = smov 0   ;;  %s637_s0 = inlined_call_operand.vmem [shape: f32[2,16,16,3], index: 0, kind: input, shape index: {}]   ;;  %s638_s1 = inlined_call_operand.vmem [shape: f32[1,1,1,3], index: 1, kind: input, shape index: {}]   ;;  %s639_s2 = inlined_call_operand.vmem [shape: f32[1,1,1,3], index: 2, kind: input, shape index: {}]   ;;  %s640_s3 = inlined_call_operand.vmem [shape: bf16[2,16,16,3], index: 3, kind: output, shape index: {}]  }
   0x1 LB: > { %s395_s13 = sadd.s32 4294967295, %s424_s12   ;;  %p399_p0 = scmp.ge.s32.totalorder %s424_s12, 1  ;;  %s424_s12 = sphi %s446_s12, %s13_s12  }
   0x2   : > { %p137_p1 = scmp.lt.s32.totalorder %s424_s12, 3 }
   0x4   : > { %p138_p2 = pnand %p399_p0, %p137_p1 }
   0x5   : > { %p161_p3 = scmp.lt.s32.totalorder (!%p138_p2), %s395_s13, 1 }
   0x6   : > { %141 = sbr.rel (%p138_p2) target bundleno = 53 (0x35), region = 32 }
   0xb   : > { %s642_s13 = smov (!%p161_p3, %s395_s13), 1  ;;  %v457_v0 = vld [vmem:[%s638_s1] ss:$0 sm:$0xff]  ;;  %vm307_vm0 = vcmask 19456  }
   0xc   : > { %s406_s16 = sshll.u32 %s642_s13, 8  ;;  %v467_v1 = vld [vmem:[%s639_s2] ss:$0 sm:$0xff]  ;;  %s407_s22 = sshll.u32 %s642_s13, 7 }
   0xd   : > { %s462_s19 = scalar_lea.vmem %s637_s0, %s406_s16  ;;  %s490_s25 = scalar_lea.vmem %s640_s3, %s407_s22 }
   0xe   : > { %v171_v2 = vld [vmem:[%s462_s19] sm:$0xff]  ;;  %v172_v3 = vld [vmem:[%s462_s19 + $0x8] sm:$0xff]  ;;  %v173_v4 = vld [vmem:[%s462_s19 + $0x10] sm:$0xff] }
   0xf   : > { %v207_v5 = vmul.f32 %v457_v0, %v171_v2  ;;  %v208_v6 = vmul.f32 %v457_v0, %v172_v3  ;;  %v209_v7 = vmul.f32 %v457_v0, %v173_v4  ;;  %v174_v8 = vld [vmem:[%s462_s19 + $0x18] sm:$0xff]  ;;  %v175_v9 = vld [vmem:[%s462_s19 + $0x20] sm:$0xff]  ;;  %v176_v10 = vld [vmem:[%s462_s19 + $0x28] sm:$0xff] }
  0x10   : > { %v210_v11 = vmul.f32 %v457_v0, %v174_v8  ;;  %v211_v12 = vmul.f32 %v457_v0, %v175_v9  ;;  %v212_v13 = vmul.f32 %v457_v0, %v176_v10  ;;  %v177_v14 = vld [vmem:[%s462_s19 + $0x30] sm:$0xff]  ;;  %v178_v15 = vld [vmem:[%s462_s19 + $0x38] sm:$0xff]  ;;  %v179_v24 = vld [vmem:[%s462_s19 + $0x40] sm:$0xff] }
  0x11   : > { %v243_v16 = vadd.f32 %v467_v1, %v207_v5  ;;  %v244_v17 = vadd.f32 %v467_v1, %v208_v6  ;;  %v245_v18 = vadd.f32 %v467_v1, %v209_v7  ;;  %v213_v19 = vmul.f32 %v457_v0, %v177_v14  ;;  %v180_v25 = vld [vmem:[%s462_s19 + $0x48] sm:$0xff]  ;;  %v181_v26 = vld [vmem:[%s462_s19 + $0x50] sm:$0xff]  ;;  %v182_v31 = vld [vmem:[%s462_s19 + $0x58] sm:$0xff] }
  0x12   : > { %v246_v20 = vadd.f32 %v467_v1, %v210_v11  ;;  %v247_v21 = vadd.f32 %v467_v1, %v211_v12  ;;  %v248_v22 = vadd.f32 %v467_v1, %v212_v13  ;;  %v214_v23 = vmul.f32 %v457_v0, %v178_v15  ;;  %v183_v32 = vld [vmem:[%s462_s19 + $0x60] sm:$0xff]  ;;  %v184_v33 = vld [vmem:[%s462_s19 + $0x68] sm:$0xff]  ;;  %v185_v37 = vld [vmem:[%s462_s19 + $0x70] sm:$0xff] }
  0x13   : > { %v275_v27 = vpack.c.bf16 %v243_v16, %v243_v16  ;;  %v276_v28 = vpack.c.bf16 %v244_v17, %v244_v17  ;;  %v277_v29 = vpack.c.bf16 %v245_v18, %v245_v18  ;;  %v249_v30 = vadd.f32 %v467_v1, %v213_v19  ;;  %v186_v42 = vld [vmem:[%s462_s19 + $0x78] sm:$0xff]  ;;  %v187_v54 = vld [vmem:[%s462_s19 + $0x80] sm:$0xff]  ;;  %v188_v55 = vld [vmem:[%s462_s19 + $0x88] sm:$0xff] }
  0x14   : > { %v278_v34 = vpack.c.bf16 %v246_v20, %v246_v20  ;;  %v279_v35 = vpack.c.bf16 %v247_v21, %v247_v21  ;;  %v250_v36 = vadd.f32 %v467_v1, %v214_v23  ;;  %v280_v38 = vpack.c.bf16 %v248_v22, %v248_v22  ;;  %v189_v56 = vld [vmem:[%s462_s19 + $0x90] sm:$0xff]  ;;  %v190_v59 = vld [vmem:[%s462_s19 + $0x98] sm:$0xff]  ;;  %v191_v63 = vld [vmem:[%s462_s19 + $0xa0] sm:$0xff] }
  0x15   : > { %308 = vst.msk [vmem:[%s490_s25] sm:$0xf] %vm307_vm0, %v275_v27  ;;  %v215_v39 = vmul.f32 %v457_v0, %v179_v24  ;;  %v216_v40 = vmul.f32 %v457_v0, %v180_v25  ;;  %v217_v41 = vmul.f32 %v457_v0, %v181_v26  ;;  %v281_v43 = vpack.c.bf16 %v249_v30, %v249_v30  ;;  %v192_v6 = vld [vmem:[%s462_s19 + $0xa8] sm:$0xff]  ;;  %v193_v10 = vld [vmem:[%s462_s19 + $0xb0] sm:$0xff]  ;;  %v194_v14 = vld [vmem:[%s462_s19 + $0xb8] sm:$0xff] }
  0x16   : > { %309 = vst.msk [vmem:[%s490_s25 + $0x4] sm:$0xf] %vm307_vm0, %v276_v28  ;;  %v218_v44 = vmul.f32 %v457_v0, %v182_v31  ;;  %v219_v45 = vmul.f32 %v457_v0, %v183_v32  ;;  %v220_v46 = vmul.f32 %v457_v0, %v184_v33  ;;  %v221_v50 = vmul.f32 %v457_v0, %v185_v37  ;;  %v195_v18 = vld [vmem:[%s462_s19 + $0xc0] sm:$0xff]  ;;  %v196_v22 = vld [vmem:[%s462_s19 + $0xc8] sm:$0xff]  ;;  %v197_v26 = vld [vmem:[%s462_s19 + $0xd0] sm:$0xff] }
  0x17   : > { %310 = vst.msk [vmem:[%s490_s25 + $0x8] sm:$0xf] %vm307_vm0, %v277_v29  ;;  %v251_v47 = vadd.f32 %v467_v1, %v215_v39  ;;  %v252_v48 = vadd.f32 %v467_v1, %v216_v40  ;;  %v253_v49 = vadd.f32 %v467_v1, %v217_v41  ;;  %v282_v51 = vpack.c.bf16 %v250_v36, %v250_v36  ;;  %v198_v30 = vld [vmem:[%s462_s19 + $0xd8] sm:$0xff] }
  0x18   : > { %311 = vst.msk [vmem:[%s490_s25 + $0xc] sm:$0xf] %vm307_vm0, %v278_v34  ;;  %v254_v52 = vadd.f32 %v467_v1, %v218_v44  ;;  %v222_v53 = vmul.f32 %v457_v0, %v186_v42  ;;  %v255_v58 = vadd.f32 %v467_v1, %v219_v45  ;;  %v256_v62 = vadd.f32 %v467_v1, %v220_v46  ;;  %v199_v34 = vld [vmem:[%s462_s19 + $0xe0] sm:$0xff]  ;;  %v201_v42 = vld [vmem:[%s462_s19 + $0xf0] sm:$0xff]  ;;  %v202_v46 = vld [vmem:[%s462_s19 + $0xf8] sm:$0xff] }
  0x19   : > { %312 = vst.msk [vmem:[%s490_s25 + $0x10] sm:$0xf] %vm307_vm0, %v279_v35  ;;  %v283_v57 = vpack.c.bf16 %v251_v47, %v251_v47  ;;  %v284_v60 = vpack.c.bf16 %v252_v48, %v252_v48  ;;  %v285_v61 = vpack.c.bf16 %v253_v49, %v253_v49  ;;  %v257_v2 = vadd.f32 %v467_v1, %v221_v50 }
  0x1a   : > { %313 = vst.msk [vmem:[%s490_s25 + $0x14] sm:$0xf] %vm307_vm0, %v280_v38  ;;  %v223_v3 = vmul.f32 %v457_v0, %v187_v54  ;;  %v224_v4 = vmul.f32 %v457_v0, %v188_v55  ;;  %v225_v5 = vmul.f32 %v457_v0, %v189_v56  ;;  %v286_v7 = vpack.c.bf16 %v254_v52, %v254_v52  ;;  %v200_v38 = vld [vmem:[%s462_s19 + $0xe8] sm:$0xff] }
  0x1b   : > { %314 = vst.msk [vmem:[%s490_s25 + $0x18] sm:$0xf] %vm307_vm0, %v281_v43  ;;  %v258_v8 = vadd.f32 %v467_v1, %v222_v53  ;;  %v226_v9 = vmul.f32 %v457_v0, %v190_v59  ;;  %v287_v11 = vpack.c.bf16 %v255_v58, %v255_v58  ;;  %v227_v13 = vmul.f32 %v457_v0, %v191_v63 }
  0x1c   : > { %315 = vst.msk [vmem:[%s490_s25 + $0x1c] sm:$0xf] %vm307_vm0, %v282_v51  ;;  %v259_v12 = vadd.f32 %v467_v1, %v223_v3  ;;  %v288_v15 = vpack.c.bf16 %v256_v62, %v256_v62  ;;  %v260_v16 = vadd.f32 %v467_v1, %v224_v4  ;;  %v228_v17 = vmul.f32 %v457_v0, %v192_v6 }
  0x1d   : > { %316 = vst.msk [vmem:[%s490_s25 + $0x20] sm:$0xf] %vm307_vm0, %v283_v57  ;;  %v289_v19 = vpack.c.bf16 %v257_v2, %v257_v2  ;;  %v261_v20 = vadd.f32 %v467_v1, %v225_v5  ;;  %v229_v21 = vmul.f32 %v457_v0, %v193_v10  ;;  %v290_v23 = vpack.c.bf16 %v258_v8, %v258_v8 }
  0x1e   : > { %317 = vst.msk [vmem:[%s490_s25 + $0x24] sm:$0xf] %vm307_vm0, %v284_v60  ;;  %v262_v24 = vadd.f32 %v467_v1, %v226_v9  ;;  %v230_v25 = vmul.f32 %v457_v0, %v194_v14  ;;  %v291_v27 = vpack.c.bf16 %v259_v12, %v259_v12  ;;  %v263_v28 = vadd.f32 %v467_v1, %v227_v13 }
  0x1f   : > { %318 = vst.msk [vmem:[%s490_s25 + $0x28] sm:$0xf] %vm307_vm0, %v285_v61  ;;  %v231_v29 = vmul.f32 %v457_v0, %v195_v18  ;;  %v292_v31 = vpack.c.bf16 %v260_v16, %v260_v16  ;;  %v264_v32 = vadd.f32 %v467_v1, %v228_v17  ;;  %v232_v33 = vmul.f32 %v457_v0, %v196_v22 }
  0x20   : > { %319 = vst.msk [vmem:[%s490_s25 + $0x2c] sm:$0xf] %vm307_vm0, %v286_v7  ;;  %v293_v35 = vpack.c.bf16 %v261_v20, %v261_v20  ;;  %v265_v36 = vadd.f32 %v467_v1, %v229_v21  ;;  %v233_v37 = vmul.f32 %v457_v0, %v197_v26  ;;  %v294_v39 = vpack.c.bf16 %v262_v24, %v262_v24 }
  0x21   : > { %320 = vst.msk [vmem:[%s490_s25 + $0x30] sm:$0xf] %vm307_vm0, %v287_v11  ;;  %v266_v40 = vadd.f32 %v467_v1, %v230_v25  ;;  %v234_v41 = vmul.f32 %v457_v0, %v198_v30  ;;  %v295_v43 = vpack.c.bf16 %v263_v28, %v263_v28  ;;  %v267_v44 = vadd.f32 %v467_v1, %v231_v29 }
  0x22   : > { %321 = vst.msk [vmem:[%s490_s25 + $0x34] sm:$0xf] %vm307_vm0, %v288_v15  ;;  %v235_v45 = vmul.f32 %v457_v0, %v199_v34  ;;  %v296_v47 = vpack.c.bf16 %v264_v32, %v264_v32  ;;  %v268_v48 = vadd.f32 %v467_v1, %v232_v33  ;;  %v236_v49 = vmul.f32 %v457_v0, %v200_v38 }
  0x23   : > { %322 = vst.msk [vmem:[%s490_s25 + $0x38] sm:$0xf] %vm307_vm0, %v289_v19  ;;  %v297_v50 = vpack.c.bf16 %v265_v36, %v265_v36  ;;  %v269_v51 = vadd.f32 %v467_v1, %v233_v37  ;;  %v237_v52 = vmul.f32 %v457_v0, %v201_v42  ;;  %v298_v53 = vpack.c.bf16 %v266_v40, %v266_v40 }
  0x24   : > { %323 = vst.msk [vmem:[%s490_s25 + $0x3c] sm:$0xf] %vm307_vm0, %v290_v23  ;;  %v270_v54 = vadd.f32 %v467_v1, %v234_v41  ;;  %v238_v55 = vmul.f32 %v457_v0, %v202_v46  ;;  %v299_v56 = vpack.c.bf16 %v267_v44, %v267_v44  ;;  %v271_v57 = vadd.f32 %v467_v1, %v235_v45 }
  0x25   : > { %324 = vst.msk [vmem:[%s490_s25 + $0x40] sm:$0xf] %vm307_vm0, %v291_v27  ;;  %v300_v58 = vpack.c.bf16 %v268_v48, %v268_v48  ;;  %v272_v59 = vadd.f32 %v467_v1, %v236_v49  ;;  %v301_v60 = vpack.c.bf16 %v269_v51, %v269_v51  ;;  %v273_v0 = vadd.f32 %v467_v1, %v237_v52 }
  0x26   : > { %325 = vst.msk [vmem:[%s490_s25 + $0x44] sm:$0xf] %vm307_vm0, %v292_v31  ;;  %v302_v61 = vpack.c.bf16 %v270_v54, %v270_v54  ;;  %v274_v62 = vadd.f32 %v467_v1, %v238_v55  ;;  %v303_v63 = vpack.c.bf16 %v271_v57, %v271_v57 }
  0x27   : > { %326 = vst.msk [vmem:[%s490_s25 + $0x48] sm:$0xf] %vm307_vm0, %v293_v35  ;;  %v304_v2 = vpack.c.bf16 %v272_v59, %v272_v59  ;;  %v305_v3 = vpack.c.bf16 %v273_v0, %v273_v0 }
  0x28   : > { %327 = vst.msk [vmem:[%s490_s25 + $0x4c] sm:$0xf] %vm307_vm0, %v294_v39  ;;  %v306_v4 = vpack.c.bf16 %v274_v62, %v274_v62 }
  0x29   : > { %328 = vst.msk [vmem:[%s490_s25 + $0x50] sm:$0xf] %vm307_vm0, %v295_v43 }
  0x2a   : > { %329 = vst.msk [vmem:[%s490_s25 + $0x54] sm:$0xf] %vm307_vm0, %v296_v47 }
  0x2b   : > { %330 = vst.msk [vmem:[%s490_s25 + $0x58] sm:$0xf] %vm307_vm0, %v297_v50 }
  0x2c   : > { %331 = vst.msk [vmem:[%s490_s25 + $0x5c] sm:$0xf] %vm307_vm0, %v298_v53 }
  0x2d   : > { %332 = vst.msk [vmem:[%s490_s25 + $0x60] sm:$0xf] %vm307_vm0, %v299_v56 }
  0x2e   : > { %333 = vst.msk [vmem:[%s490_s25 + $0x64] sm:$0xf] %vm307_vm0, %v300_v58 }
  0x2f   : > { %334 = vst.msk [vmem:[%s490_s25 + $0x68] sm:$0xf] %vm307_vm0, %v301_v60 }
  0x30   : > { %335 = vst.msk [vmem:[%s490_s25 + $0x6c] sm:$0xf] %vm307_vm0, %v302_v61 }
  0x31   : > { %336 = vst.msk [vmem:[%s490_s25 + $0x70] sm:$0xf] %vm307_vm0, %v303_v63 }
  0x32   : > { %337 = vst.msk [vmem:[%s490_s25 + $0x74] sm:$0xf] %vm307_vm0, %v304_v2 }
  0x33   : > { %338 = vst.msk [vmem:[%s490_s25 + $0x78] sm:$0xf] %vm307_vm0, %v305_v3 }
  0x34   : > { %339 = vst.msk [vmem:[%s490_s25 + $0x7c] sm:$0xf] %vm307_vm0, %v306_v4 }
  0x35 PF: > { %s13_s12 = sadd.s32 1, %s424_s12  }
  0x36   : > { %p10_p4 = scmp.ge.s32.totalorder %s13_s12, 4  }
  0x38   :  { %12 = sbr.rel (!%p10_p4) target bundleno = 1 (0x1), region = 62 }

</bundles_post_ra>
